<compile_context>
chip_gen: v6e
topology: v6e:2x2x1
jax: 0.10.0
libtpu: 0.0.40
codegen_flags: <defaults>
</compile_context>

<pallas_src>
import jax
import jax.numpy as jnp
from jax.experimental import pallas as pl
from jax.experimental.pallas import tpu as pltpu

_SUBLANE = 8
_LANE = 128
_TARGET_BLOCK_BYTES = 4 * 1024 * 1024          # ~4 MiB per block
_MAX_ROW_BYTES = _TARGET_BLOCK_BYTES // _SUBLANE  # keep >= 8 rows per block


def _identity_kernel(x_ref, o_ref):
    # Pure copy of the current VMEM tile.
    o_ref[...] = x_ref[...]


def _lane_dense_2d(total, orig_shape):
    """Pick a (rows, cols) view with cols a wide multiple of 128 when possible."""
    for cols in (4096, 2048, 1024, 512, 256, 128):
        if total % cols == 0:
            return total // cols, cols
    # Fallback: keep the original trailing dim as lanes (full-extent blocks
    # are always legal even if not 128-aligned).
    if len(orig_shape) >= 2:
        cols = orig_shape[-1]
        return total // cols, cols
    return 1, total


def _choose_tiles(rows, cols, itemsize):
    # Column tile: full cols when a single row-slab is small, else a
    # 128-aligned chunk so one block stays within the byte budget.
    if cols * itemsize <= _MAX_ROW_BYTES:
        tc = cols
    else:
        tc = max(_LANE, (_MAX_ROW_BYTES // (itemsize * _LANE)) * _LANE)
    # Row tile from the byte budget: multiple of 8, or the full row extent.
    row_budget = max(
        _SUBLANE,
        (_TARGET_BLOCK_BYTES // max(1, tc * itemsize)) // _SUBLANE * _SUBLANE,
    )
    if rows <= row_budget:
        tr = rows
        # If the whole array would be a single block, split the rows in two
        # (sublane-aligned) pieces so v7x's 2 TensorCores both get grid work.
        if cols <= tc and rows >= 2 * _SUBLANE:
            half = -(-rows // 2)
            tr = (half + _SUBLANE - 1) // _SUBLANE * _SUBLANE
    else:
        tr = row_budget
    return tr, tc


def identity(x: jax.Array) -> jax.Array:
    """Identity forward pass: returns x (same shape / dtype / values)."""
    orig_shape = x.shape
    if x.size == 0:
        return x  # nothing to move

    total = x.size
    itemsize = x.dtype.itemsize
    rows, cols = _lane_dense_2d(total, orig_shape)
    x2 = x.reshape(rows, cols)

    tr, tc = _choose_tiles(rows, cols, itemsize)
    grid = (pl.cdiv(rows, tr), pl.cdiv(cols, tc))
    block_bytes = tr * tc * itemsize
    # in + out, double-buffered, plus generous headroom for internal scratch.
    vmem_limit = 2 * 2 * block_bytes + 16 * 1024 * 1024

    out2 = pl.pallas_call(
        _identity_kernel,
        out_shape=jax.ShapeDtypeStruct((rows, cols), x.dtype),
        grid=grid,
        in_specs=[pl.BlockSpec((tr, tc), lambda i, j: (i, j))],
        out_specs=pl.BlockSpec((tr, tc), lambda i, j: (i, j)),
        # The output HBM buffer IS the input buffer: no new allocation, and
        # under jit with a donated operand the copy collapses to ~zero traffic.
        input_output_aliases={0: 0},
        compiler_params=pltpu.CompilerParams(
            dimension_semantics=("parallel", "parallel"),
            vmem_limit_bytes=int(vmem_limit),
        ),
    )(x2)

    return out2.reshape(orig_shape)


if __name__ == "__main__":
    key = jax.random.PRNGKey(0)

    # Primary check: small NCHW input consistent with typical usage.
    x = jax.random.normal(key, (2, 4, 16, 16), dtype=jnp.float32)
    y = identity(x)
    jax.block_until_ready(y)
    assert y.shape == x.shape, f"shape mismatch: {y.shape} vs {x.shape}"
    assert y.dtype == x.dtype, f"dtype mismatch: {y.dtype} vs {x.dtype}"
    assert bool(jnp.all(y == x)), "identity output differs from input"

    # Odd shape (exercises the non-128-divisible fallback, full-extent blocks).
    x2 = jax.random.normal(jax.random.PRNGKey(1), (3, 5, 36), dtype=jnp.float32)
    y2 = identity(x2)
    jax.block_until_ready(y2)
    assert y2.shape == x2.shape and bool(jnp.all(y2 == x2))

    # Larger shape (exercises lane-dense re-chunk + a 2-step grid for megacore).
    x3 = jax.random.normal(jax.random.PRNGKey(2), (8, 16, 32, 32), dtype=jnp.float32)
    y3 = identity(x3)
    jax.block_until_ready(y3)
    assert y3.shape == x3.shape and bool(jnp.all(y3 == x3))

    print("KERNEL_OK")
</pallas_src>

<mosaic_0001>
module attributes {stable_mosaic.version = 11 : i64} {
  func.func @_identity_kernel(%arg0: i32, %arg1: i32, %arg2: memref<1x2048xf32, #tpu.memory_space<vmem>>, %arg3: memref<1x2048xf32, #tpu.memory_space<vmem>>) attributes {dimension_semantics = [#tpu.dimension_semantics<parallel>, #tpu.dimension_semantics<parallel>], iteration_bounds = array<i64: 1, 1>, scalar_prefetch = 0 : i64, scratch_operands = 0 : i64, tpu.core_type = #tpu.core_type<tc>, window_params = [{transform_indices = @transform_0, window_bounds = array<i64: 1, 2048>}, {transform_indices = @transform_1, window_bounds = array<i64: 1, 2048>}]} {
    %c0 = arith.constant 0 : index
    %c0_0 = arith.constant 0 : index
    %0 = vector.load %arg2[%c0, %c0_0] : memref<1x2048xf32, #tpu.memory_space<vmem>>, vector<1x2048xf32>
    %c0_1 = arith.constant 0 : index
    %c0_2 = arith.constant 0 : index
    %1 = vector.load %arg3[%c0_1, %c0_2] : memref<1x2048xf32, #tpu.memory_space<vmem>>, vector<1x2048xf32>
    tpu.vector_store %arg3[%c0_1, %c0_2], %0 {strides = array<i32>} : memref<1x2048xf32, #tpu.memory_space<vmem>>, vector<1x2048xf32>,
    return
  }
  func.func @transform_0(%arg0: i32, %arg1: i32) -> (i32, i32) {
    %c0_i32 = arith.constant 0 : i32
    return %arg0, %arg1 : i32, i32
  }
  func.func @transform_1(%arg0: i32, %arg1: i32) -> (i32, i32) {
    %c0_i32 = arith.constant 0 : i32
    return %arg0, %arg1 : i32, i32
  }
}

</mosaic_0001>

<bundles_post_ra>
// kernel: tpu_custom_call.1
= control target key start
LH: loop header
LB: loop body
LE: loop exit
PB: predicated region body
PF: predicated region fallthrough
CT: control target
= control target key end

     0   :  { %6 = vsyncpa [#allocation3], 0  ;;  %s104_s0 = inlined_call_operand.hbm [shape: f32[1,2048], index: 0, kind: input, shape index: {}, may-alias: {0,1}]   ;;  %s105_s1 = inlined_call_operand.hbm [shape: f32[1,2048], index: 1, kind: output, shape index: {}, may-alias: {0,1}]  }
   0x1   :  { %7 = vsyncpa [#allocation4], 0  ;;  %s86_s6 = smov [#allocation2]  }
   0x2   :  { %s14_s7 = sshll.u32 %s86_s6, 4  ;;  %s15_s7 = int_to_ptr.vmem [resolvable:$true] %s14_s7 }
   0x3   :  { %s50_s8 = scalar_lea.vmem %s15_s7, 256  ;;  %p55_p1 = scmp.lt.s32.totalorder %s15_s7, %s15_s7 }
   0x4   :  { %p51_p0 = scmp.ne.s32.totalorder %s15_s7, %s50_s8  ;;  %p56_p2 = scmp.lt.s32.totalorder %s50_s8, %s50_s8 }
   0x6   :  { %p57_p3 = por %p56_p2, %p55_p1 }
   0x8   :  { %p58_p4 = pnand %p57_p3, %p51_p0 }
   0xa   :  { %61 = shalt.err (!%p58_p4)
}
   0xb   :  { %17 = dma.hbm_to_vmem [thread:$0]  %s104_s0, 256, %s15_s7, [#allocation3]  }
   0xc   :  { %82 = dma.done.wait [#allocation3], 256  }
   0xd   :  { %83 = vsyncadd [#allocation3], 4294967040  ;;  %s87_s11 = smov [#allocation5]   ;;  %v21_v0 = vld [vmem:[#allocation2] sm:$0xff]  ;;  %v22_v1 = vld [vmem:[#allocation2 + $0x8] sm:$0xff] }
   0xe   :  { %s31_s12 = sshll.u32 %s87_s11, 4  ;;  %23 = vst [vmem:[#allocation5] sm:$0xff] %v21_v0  ;;  %24 = vst [vmem:[#allocation5 + $0x8] sm:$0xff] %v22_v1  ;;  %s32_s12 = int_to_ptr.vmem [resolvable:$true] %s31_s12 }
   0xf   :  { %s62_s13 = scalar_lea.vmem %s32_s12, 256  ;;  %p67_p6 = scmp.lt.s32.totalorder %s32_s12, %s32_s12 }
  0x10   :  { %p63_p5 = scmp.ne.s32.totalorder %s32_s12, %s62_s13  ;;  %p68_p7 = scmp.lt.s32.totalorder %s62_s13, %s62_s13 }
  0x12   :  { %p69_p8 = por %p68_p7, %p67_p6 }
  0x14   :  { %p70_p9 = pnand %p69_p8, %p63_p5 }
  0x16   :  { %73 = shalt.err (!%p70_p9)
}
  0x17   :  { %34 = dma.vmem_to_hbm [thread:$0]  %s32_s12, 256, %s105_s1, [#allocation4]  }
  0x18   :  { %84 = dma.done.wait [#allocation4], 256  }
  0x19   :  { %85 = vsyncadd [#allocation4], 4294967040 }
  0x1a   :  { %38 = vsyncpa [#allocation3], 1 }
  0x1b   :  { %39 = vsyncpa [#allocation4], 1 }

</bundles_post_ra>
